<compile_context>
chip_gen: v7x
topology: tpu7x:2x2x1
jax: 0.10.0
libtpu: 0.0.40
codegen_flags: <defaults>
</compile_context>

<pallas_src>
import jax
import jax.numpy as jnp
from jax.experimental import pallas as pl
from jax.experimental.pallas import tpu as pltpu

LANES = 128        # TPU lane width
ROW_ALIGN = 16     # bf16 sublane tile height -> aligned weight-slab views


def _round_up(x, m):
    return ((x + m - 1) // m) * m


def make_params(key, state_in, prev_action_in, next_state_in, hidden_dim, action_dim):
    """Plain per-layer f32 parameters (stand-in for the torch module's weights)."""
    h2 = hidden_dim // 2
    ks = jax.random.split(key, 12)

    def lin(k, fi, fo):
        return jax.random.normal(k, (fi, fo), jnp.float32) / jnp.sqrt(float(fi))

    def bias(k, fo):
        return jax.random.normal(k, (1, fo), jnp.float32) * 0.01

    return {
        "w_s": lin(ks[0], state_in, h2), "b_s": bias(ks[1], h2),
        "w_pa": lin(ks[2], prev_action_in, h2), "b_pa": bias(ks[3], h2),
        "w_mid": lin(ks[4], hidden_dim, h2), "b_mid": bias(ks[5], h2),
        "w_ns": lin(ks[6], next_state_in, h2), "b_ns": bias(ks[7], h2),
        "w_a1": lin(ks[8], hidden_dim, hidden_dim), "b_a1": bias(ks[9], hidden_dim),
        "w_a2": lin(ks[10], hidden_dim, action_dim), "b_a2": bias(ks[11], action_dim),
    }


def fuse_params(p, state_in, pa_in, ns_in, hidden_dim, action_dim):
    """One bf16 weight slab + one f32 bias/mask slab + static layout metadata.

    With 2-group packing the block-diagonal layout is replicated per group g
    at lane offset g*GS (GS = 128 // groups):
      lanes [g*GS+0,   g*GS+h2)    : h_s   / h_mid / action outputs
      lanes [g*GS+h2,  g*GS+2*h2)  : h_pa
      lanes [g*GS+2h2, g*GS+3*h2)  : h_ns
    """
    h2 = hidden_dim // 2
    assert hidden_dim % 2 == 0 and hidden_dim % ROW_ALIGN == 0

    # 2-group lane packing when the per-group layout fits in 64 lanes.
    groups = 2 if (3 * h2 <= LANES // 2 and hidden_dim <= LANES // 2
                   and action_dim <= LANES // 2) else 1
    GS = LANES // groups
    assert 3 * h2 <= GS and hidden_dim <= GS and action_dim <= GS

    k_ent = _round_up(state_in + pa_in + ns_in, ROW_ALIGN)
    k_ent_rows = groups * k_ent

    w_ent = jnp.zeros((k_ent_rows, LANES), jnp.float32)
    w_mid = jnp.zeros((LANES, LANES), jnp.float32)
    w_a1 = jnp.zeros((LANES, LANES), jnp.float32)
    w_a2 = jnp.zeros((LANES, LANES), jnp.float32)
    b_slab = jnp.zeros((8, LANES), jnp.float32)

    for g in range(groups):
        r0 = g * k_ent          # row offset of this group's input in x_packed
        l0 = g * GS             # lane offset of this group's activations

        # Entry layer: block-diagonal state|prev_action|next_state.
        w_ent = w_ent.at[r0:r0 + state_in, l0:l0 + h2].set(p["w_s"])
        w_ent = w_ent.at[r0 + state_in:r0 + state_in + pa_in,
                         l0 + h2:l0 + 2 * h2].set(p["w_pa"])
        w_ent = w_ent.at[r0 + state_in + pa_in:r0 + state_in + pa_in + ns_in,
                         l0 + 2 * h2:l0 + 3 * h2].set(p["w_ns"])

        # middle_net on cat(h_s, h_pa) = lanes [l0, l0+hidden); zero rows elsewhere.
        w_mid = w_mid.at[l0:l0 + hidden_dim, l0:l0 + h2].set(p["w_mid"])

        # action_net[0] on [h_mid @ lanes l0..l0+h2-1, h_ns @ lanes l0+2h2..l0+3h2-1].
        w_a1 = w_a1.at[l0:l0 + h2, l0:l0 + hidden_dim].set(p["w_a1"][0:h2])
        w_a1 = w_a1.at[l0 + 2 * h2:l0 + 3 * h2,
                       l0:l0 + hidden_dim].set(p["w_a1"][h2:hidden_dim])

        # action_net[2]: output lanes [l0, l0+action_dim).
        w_a2 = w_a2.at[l0:l0 + hidden_dim, l0:l0 + action_dim].set(p["w_a2"])

        # Biases (rows 0-3) and the h_ns lane-select mask (row 4).
        b_slab = b_slab.at[0, l0:l0 + h2].set(p["b_s"][0])
        b_slab = b_slab.at[0, l0 + h2:l0 + 2 * h2].set(p["b_pa"][0])
        b_slab = b_slab.at[0, l0 + 2 * h2:l0 + 3 * h2].set(p["b_ns"][0])
        b_slab = b_slab.at[1, l0:l0 + h2].set(p["b_mid"][0])
        b_slab = b_slab.at[2, l0:l0 + hidden_dim].set(p["b_a1"][0])
        b_slab = b_slab.at[3, l0:l0 + action_dim].set(p["b_a2"][0])
        b_slab = b_slab.at[4, l0 + 2 * h2:l0 + 3 * h2].set(1.0)

    w_slab = jnp.concatenate([w_ent, w_mid, w_a1, w_a2], axis=0).astype(jnp.bfloat16)

    meta = dict(
        groups=groups, GS=GS, k_ent=k_ent, k_ent_rows=k_ent_rows,
        r_mid=k_ent_rows, r_a1=k_ent_rows + LANES, r_a2=k_ent_rows + 2 * LANES,
        h2=h2, hidden=hidden_dim, action_dim=action_dim,
        in_dim=state_in + pa_in + ns_in,
    )
    return w_slab, b_slab, meta


def _build_kernel(meta):
    bf16, f32 = jnp.bfloat16, jnp.float32
    k_ent_rows, r_mid, r_a1, r_a2 = (meta["k_ent_rows"], meta["r_mid"],
                                     meta["r_a1"], meta["r_a2"])

    def kernel(x_ref, w_ref, b_ref, out_ref):
        b = b_ref[...]                                  # [8,128] f32 (biases + mask)
        x = x_ref[...]                                  # [TB, groups*k_ent] bf16

        # (1) fused entry layer: state_net | prev_action_net | next_state_net
        #     (both lane groups in one matmul).
        w_ent = w_ref[pl.ds(0, k_ent_rows), :]
        h_ent = jnp.maximum(
            jnp.dot(x, w_ent, preferred_element_type=f32) + b[0:1, :], 0.0)

        # (2) middle_net on cat(h_s, h_pa); zero weight rows/lanes elsewhere,
        #     so h_mid is exactly zero outside each group's first h2 lanes.
        w_mid = w_ref[pl.ds(r_mid, LANES), :]
        h_mid = jnp.maximum(
            jnp.dot(h_ent.astype(bf16), w_mid, preferred_element_type=f32) + b[1:2, :], 0.0)

        # (3) action_net[0] on [h_mid | 0 | h_ns | 0] per group, assembled with
        #     the precomputed mask row b[4] (no iota/select needed).
        a1_in = (h_mid + h_ent * b[4:5, :]).astype(bf16)
        w_a1 = w_ref[pl.ds(r_a1, LANES), :]
        h_a1 = jnp.maximum(
            jnp.dot(a1_in, w_a1, preferred_element_type=f32) + b[2:3, :], 0.0)

        # (4) action_net[2] + tanh; bf16 128-lane-padded output (unmasked store).
        w_a2 = w_ref[pl.ds(r_a2, LANES), :]
        out_ref[...] = jnp.tanh(
            jnp.dot(h_a1.astype(bf16), w_a2, preferred_element_type=f32) + b[3:4, :]
        ).astype(out_ref.dtype)

    return kernel


def inverse_model_forward(state, prev_action, next_state, w_slab, b_slab, meta,
                          batch_tile=2048):
    B = state.shape[0]
    groups, GS = meta["groups"], meta["GS"]
    k_ent, in_dim, ad = meta["k_ent"], meta["in_dim"], meta["action_dim"]

    # Lane-concat the three inputs once; pad K only to the (16-aligned) fused
    # width -- NOT to 128 lanes (keeps the input HBM stream small).
    x = jnp.concatenate([state, prev_action, next_state], axis=-1)
    if k_ent > in_dim:
        x = jnp.pad(x, ((0, 0), (0, k_ent - in_dim)))

    # Pack `groups` batch shards side-by-side in lanes: row r of the packed
    # input holds [x[r] | x[rows + r]]; the replicated block-diag weights send
    # shard g to lanes [g*GS, g*GS + ...).  Halves rows everywhere downstream.
    bp = _round_up(B, groups)
    if bp > B:
        x = jnp.pad(x, ((0, bp - B), (0, 0)))
    rows = bp // groups
    x = x.reshape(groups, rows, k_ent).transpose(1, 0, 2).reshape(rows, groups * k_ent)

    # Row tiling: large tiles amortize ~0.35us/step pipeline overhead, but keep
    # >= 2 grid steps whenever possible so v7x's 2 TensorCores both get work.
    if rows <= 8:
        tb = rows
        rows_p = rows
    else:
        tb = min(batch_tile, _round_up(-(-rows // 2), 8))
        rows_p = _round_up(rows, tb)
    if rows_p > rows:
        x = jnp.pad(x, ((0, rows_p - rows), (0, 0)))
    x = x.astype(jnp.bfloat16)          # bf16 operands, f32 accumulation in-kernel

    out = pl.pallas_call(
        _build_kernel(meta),
        out_shape=jax.ShapeDtypeStruct((rows_p, LANES), jnp.bfloat16),
        grid=(rows_p // tb,),
        in_specs=[
            pl.BlockSpec((tb, groups * k_ent), lambda i: (i, 0)),  # activations: tiled over rows
            pl.BlockSpec(w_slab.shape, lambda i: (0, 0)),          # weight slab: VMEM-resident
            pl.BlockSpec(b_slab.shape, lambda i: (0, 0)),          # bias/mask slab: VMEM-resident
        ],
        out_specs=pl.BlockSpec((tb, LANES), lambda i: (i, 0)),
        # NOTE(v5e): if xprof shows exposed output DMA at large B, add
        # pipeline_mode=pl.Buffered(3) to the activation/out specs.
        compiler_params=pltpu.CompilerParams(
            dimension_semantics=("parallel",)),
    )(x, w_slab, b_slab)

    # Unpack the lane groups back into batch order; padded rows/lanes discarded.
    out = out[:rows]
    parts = [out[:, g * GS:g * GS + ad] for g in range(groups)]
    return jnp.concatenate(parts, axis=0)[:B].astype(jnp.float32)


def reference_forward(state, prev_action, next_state, p):
    """Pure-JAX reference with the same bf16-operand / f32-accumulate numerics."""
    bf16, f32 = jnp.bfloat16, jnp.float32
    relu = lambda v: jnp.maximum(v, 0.0)
    dot = lambda a, w: jnp.dot(a.astype(bf16), w.astype(bf16), preferred_element_type=f32)
    h_s = relu(dot(state, p["w_s"]) + p["b_s"])
    h_pa = relu(dot(prev_action, p["w_pa"]) + p["b_pa"])
    h_mid = relu(dot(jnp.concatenate([h_s, h_pa], -1), p["w_mid"]) + p["b_mid"])
    h_ns = relu(dot(next_state, p["w_ns"]) + p["b_ns"])
    h_a1 = relu(dot(jnp.concatenate([h_mid, h_ns], -1), p["w_a1"]) + p["b_a1"])
    return jnp.tanh(dot(h_a1, p["w_a2"]) + p["b_a2"])


if __name__ == "__main__":
    # Env-like dimensions (develop_version == 1):
    #   position_dim=3, rotation_dim=4, action_dim=4, n_history=2, hidden_dim=32
    position_dim, rotation_dim, action_dim, n_history, hidden_dim = 3, 4, 4, 2, 32
    state_in = (position_dim + rotation_dim) * 2 * n_history        # 28
    next_state_in = position_dim + rotation_dim                     # 7
    prev_action_in = action_dim * (n_history - 1)                   # 4

    key = jax.random.PRNGKey(0)
    k_s, k_pa, k_ns, k_p = jax.random.split(key, 4)
    params = make_params(k_p, state_in, prev_action_in, next_state_in,
                         hidden_dim, action_dim)
    w_slab, b_slab, meta = fuse_params(params, state_in, prev_action_in,
                                       next_state_in, hidden_dim, action_dim)

    ok = True
    # Two batch sizes: tiny (single grid step) and one that exercises the
    # 2-group packing, batch padding and the >=2-step grid path.
    for batch in (2, 33):
        ks, kpa, kns = jax.random.split(jax.random.fold_in(key, batch), 3)
        state = jax.random.normal(ks, (batch, state_in), jnp.float32)
        prev_action = jax.random.normal(kpa, (batch, prev_action_in), jnp.float32)
        next_state = jax.random.normal(kns, (batch, next_state_in), jnp.float32)

        action = inverse_model_forward(state, prev_action, next_state,
                                       w_slab, b_slab, meta)
        action = jax.block_until_ready(action)
        ref = reference_forward(state, prev_action, next_state, params)

        assert action.shape == (batch, action_dim)
        close = jnp.allclose(action, ref, atol=5e-3, rtol=5e-3)
        assert close, (f"batch={batch} max abs diff = "
                       f"{jnp.max(jnp.abs(action - ref))}")
        ok = ok and bool(close)

    if ok:
        print("KERNEL_OK")
</pallas_src>

<mosaic_0001>
module attributes {stable_mosaic.version = 11 : i64} {
  func.func @kernel(%arg0: i32, %arg1: memref<1x96xbf16, #tpu.memory_space<vmem>>, %arg2: memref<480x128xbf16, #tpu.memory_space<vmem>>, %arg3: memref<8x128xf32, #tpu.memory_space<vmem>>, %arg4: memref<1x128xbf16, #tpu.memory_space<vmem>>) attributes {dimension_semantics = [#tpu.dimension_semantics<parallel>], iteration_bounds = array<i64: 1>, scalar_prefetch = 0 : i64, scratch_operands = 0 : i64, tpu.core_type = #tpu.core_type<tc>, window_params = [{transform_indices = @transform_0, window_bounds = array<i64: 1, 96>}, {pipeline_mode = #tpu.pipeline_mode<synchronous>, transform_indices = @transform_1, window_bounds = array<i64: 480, 128>}, {pipeline_mode = #tpu.pipeline_mode<synchronous>, transform_indices = @transform_2, window_bounds = array<i64: 8, 128>}, {transform_indices = @transform_3, window_bounds = array<i64: 1, 128>}]} {
    %c0 = arith.constant 0 : index
    %c0_0 = arith.constant 0 : index
    %0 = vector.load %arg3[%c0, %c0_0] : memref<8x128xf32, #tpu.memory_space<vmem>>, vector<8x128xf32>
    %c0_1 = arith.constant 0 : index
    %c0_2 = arith.constant 0 : index
    %1 = vector.load %arg1[%c0_1, %c0_2] : memref<1x96xbf16, #tpu.memory_space<vmem>>, vector<1x96xbf16>
    %c0_3 = arith.constant 0 : index
    %c0_4 = arith.constant 0 : index
    %2 = vector.load %arg2[%c0_3, %c0_4] : memref<480x128xbf16, #tpu.memory_space<vmem>>, vector<96x128xbf16>
    %cst = arith.constant dense<0.000000e+00> : vector<1x128xf32>
    %3 = tpu.matmul %1, %2, %cst {dimension_numbers = #tpu.dot_dimension_numbers<[1], [0], [0], [1], [0, 0, 1, 1], [], []>} : vector<1x96xbf16>, vector<96x128xbf16>, vector<1x128xf32> -> vector<1x128xf32>
    %4 = vector.extract_strided_slice %0 {offsets = [0, 0], sizes = [1, 128], strides = [1, 1]} : vector<8x128xf32> to vector<1x128xf32>
    %5 = arith.addf %3, %4 : vector<1x128xf32>
    %cst_5 = arith.constant 0.000000e+00 : f32
    %6 = vector.broadcast %cst_5 : f32 to vector<1x128xf32>
    %7 = arith.maximumf %5, %6 : vector<1x128xf32>
    %c96 = arith.constant 96 : index
    %c0_6 = arith.constant 0 : index
    %8 = vector.load %arg2[%c96, %c0_6] : memref<480x128xbf16, #tpu.memory_space<vmem>>, vector<128x128xbf16>
    %9 = arith.truncf %7 : vector<1x128xf32> to vector<1x128xbf16>
    %cst_7 = arith.constant dense<0.000000e+00> : vector<1x128xf32>
    %10 = tpu.matmul %9, %8, %cst_7 {dimension_numbers = #tpu.dot_dimension_numbers<[1], [0], [0], [1], [0, 0, 1, 1], [], []>} : vector<1x128xbf16>, vector<128x128xbf16>, vector<1x128xf32> -> vector<1x128xf32>
    %11 = vector.extract_strided_slice %0 {offsets = [1, 0], sizes = [1, 128], strides = [1, 1]} : vector<8x128xf32> to vector<1x128xf32>
    %12 = arith.addf %10, %11 : vector<1x128xf32>
    %cst_8 = arith.constant 0.000000e+00 : f32
    %13 = vector.broadcast %cst_8 : f32 to vector<1x128xf32>
    %14 = arith.maximumf %12, %13 : vector<1x128xf32>
    %15 = vector.extract_strided_slice %0 {offsets = [4, 0], sizes = [1, 128], strides = [1, 1]} : vector<8x128xf32> to vector<1x128xf32>
    %16 = arith.mulf %7, %15 : vector<1x128xf32>
    %17 = arith.addf %14, %16 : vector<1x128xf32>
    %18 = arith.truncf %17 : vector<1x128xf32> to vector<1x128xbf16>
    %c224 = arith.constant 224 : index
    %c0_9 = arith.constant 0 : index
    %19 = vector.load %arg2[%c224, %c0_9] : memref<480x128xbf16, #tpu.memory_space<vmem>>, vector<128x128xbf16>
    %cst_10 = arith.constant dense<0.000000e+00> : vector<1x128xf32>
    %20 = tpu.matmul %18, %19, %cst_10 {dimension_numbers = #tpu.dot_dimension_numbers<[1], [0], [0], [1], [0, 0, 1, 1], [], []>} : vector<1x128xbf16>, vector<128x128xbf16>, vector<1x128xf32> -> vector<1x128xf32>
    %21 = vector.extract_strided_slice %0 {offsets = [2, 0], sizes = [1, 128], strides = [1, 1]} : vector<8x128xf32> to vector<1x128xf32>
    %22 = arith.addf %20, %21 : vector<1x128xf32>
    %cst_11 = arith.constant 0.000000e+00 : f32
    %23 = vector.broadcast %cst_11 : f32 to vector<1x128xf32>
    %24 = arith.maximumf %22, %23 : vector<1x128xf32>
    %c352 = arith.constant 352 : index
    %c0_12 = arith.constant 0 : index
    %25 = vector.load %arg2[%c352, %c0_12] : memref<480x128xbf16, #tpu.memory_space<vmem>>, vector<128x128xbf16>
    %26 = arith.truncf %24 : vector<1x128xf32> to vector<1x128xbf16>
    %cst_13 = arith.constant dense<0.000000e+00> : vector<1x128xf32>
    %27 = tpu.matmul %26, %25, %cst_13 {dimension_numbers = #tpu.dot_dimension_numbers<[1], [0], [0], [1], [0, 0, 1, 1], [], []>} : vector<1x128xbf16>, vector<128x128xbf16>, vector<1x128xf32> -> vector<1x128xf32>
    %28 = vector.extract_strided_slice %0 {offsets = [3, 0], sizes = [1, 128], strides = [1, 1]} : vector<8x128xf32> to vector<1x128xf32>
    %29 = arith.addf %27, %28 : vector<1x128xf32>
    %30 = math.tanh %29 : vector<1x128xf32>
    %31 = arith.truncf %30 : vector<1x128xf32> to vector<1x128xbf16>
    %c0_14 = arith.constant 0 : index
    %c0_15 = arith.constant 0 : index
    %32 = vector.load %arg4[%c0_14, %c0_15] : memref<1x128xbf16, #tpu.memory_space<vmem>>, vector<1x128xbf16>
    tpu.vector_store %arg4[%c0_14, %c0_15], %31 {strides = array<i32>} : memref<1x128xbf16, #tpu.memory_space<vmem>>, vector<1x128xbf16>,
    return
  }
  func.func @transform_0(%arg0: i32) -> (i32, i32) {
    %c0_i32 = arith.constant 0 : i32
    %c0_i32_0 = arith.constant 0 : i32
    return %arg0, %c0_i32 : i32, i32
  }
  func.func @transform_1(%arg0: i32) -> (i32, i32) {
    %c0_i32 = arith.constant 0 : i32
    %c0_i32_0 = arith.constant 0 : i32
    %c0_i32_1 = arith.constant 0 : i32
    return %c0_i32, %c0_i32_0 : i32, i32
  }
  func.func @transform_2(%arg0: i32) -> (i32, i32) {
    %c0_i32 = arith.constant 0 : i32
    %c0_i32_0 = arith.constant 0 : i32
    %c0_i32_1 = arith.constant 0 : i32
    return %c0_i32, %c0_i32_0 : i32, i32
  }
  func.func @transform_3(%arg0: i32) -> (i32, i32) {
    %c0_i32 = arith.constant 0 : i32
    %c0_i32_0 = arith.constant 0 : i32
    return %arg0, %c0_i32 : i32, i32
  }
}

</mosaic_0001>

<bundles_post_ra>
// kernel: tpu_custom_call.1
= control target key start
LH: loop header
LB: loop body
LE: loop exit
PB: predicated region body
PF: predicated region fallthrough
CT: control target
= control target key end

     0   :  { %8 = vsyncpa [#allocation3], 0  ;;  %s889_s0 = inlined_call_operand.hbm [shape: bf16[1,96], index: 0, kind: input, shape index: {}]   ;;  %s890_s1 = inlined_call_operand.hbm [shape: bf16[480,128], index: 1, kind: input, shape index: {}]   ;;  %s891_s2 = inlined_call_operand.hbm [shape: f32[8,128], index: 2, kind: input, shape index: {}]   ;;  %s892_s3 = inlined_call_operand.hbm [shape: bf16[1,128], index: 3, kind: output, shape index: {}]  }
   0x1   :  { %9 = vsyncpa [#allocation6], 0 }
   0x2   :  { %10 = vsyncpa [#allocation4], 0  ;;  %s775_s12 = smov [#allocation5]   ;;  %s681_s16 = scalar_lea.hbm %s890_s1, 3840 }
   0x3   :  { %s26_s13 = sshll.u32 %s775_s12, 4  ;;  %p682_p0 = scmp.ne.s32.totalorder %s890_s1, %s681_s16  ;;  %s27_s13 = int_to_ptr.vmem [resolvable:$true] %s26_s13 }
   0x4   :  { %p685_p1 = scmp.lt.u32.totalorder %s681_s16, %s890_s1 }
   0x6   :  { %p687_p2 = pnand %p685_p1, %p682_p0 }
   0x8   :  { %690 = shalt.err (!%p687_p2)
}
   0x9   :  { %s691_s21 = scalar_lea.vmem %s27_s13, 3840  ;;  %p696_p4 = scmp.lt.s32.totalorder %s27_s13, %s27_s13 }
   0xa   :  { %p692_p3 = scmp.ne.s32.totalorder %s27_s13, %s691_s21  ;;  %p697_p5 = scmp.lt.s32.totalorder %s691_s21, %s691_s21 }
   0xc   :  { %p698_p6 = por %p697_p5, %p696_p4 }
   0xe   :  { %p699_p7 = pnand %p698_p6, %p692_p3 }
  0x10   :  { %702 = shalt.err (!%p699_p7)
}
  0x11   :  { %s776_s22 = smov 64   ;;  %s777_s23 = smov 4  }
  0x12   :  { %32 = dma.hbm_to_vmem [thread:$0]  %s890_s1, 3840, %s27_s13, [#allocation6], %s776_s22, %s776_s22, %s777_s23  }
  0x13   :  { %s778_s26 = smov [#allocation2]   ;;  %s779_s28 = smov [#allocation7]  }
  0x14   :  { %s17_s27 = sshll.u32 %s778_s26, 4  ;;  %s39_s29 = sshll.u32 %s779_s28, 4  ;;  %s18_s27 = int_to_ptr.vmem [resolvable:$true] %s17_s27  ;;  %s40_s29 = int_to_ptr.vmem [resolvable:$true] %s39_s29 }
  0x15   :  { %s703_s5 = scalar_lea.hbm %s889_s0, 16 }
  0x16   :  { %p704_p8 = scmp.ne.s32.totalorder %s889_s0, %s703_s5  ;;  %p707_p9 = scmp.lt.u32.totalorder %s703_s5, %s889_s0 }
  0x18   :  { %p709_p10 = pnand %p707_p9, %p704_p8 }
  0x1a   :  { %712 = shalt.err (!%p709_p10)
}
  0x1b   :  { %s713_s1 = scalar_lea.vmem %s18_s27, 16  ;;  %s717_s10 = scalar_lea.vmem %s18_s27, 32 }
  0x1c   :  { %p714_p11 = scmp.ne.s32.totalorder %s18_s27, %s713_s1  ;;  %p718_p12 = scmp.lt.s32.totalorder %s18_s27, %s18_s27 }
  0x1d   :  { %p719_p13 = scmp.lt.s32.totalorder %s717_s10, %s713_s1 }
  0x1f   :  { %p720_p0 = por %p719_p13, %p718_p12 }
  0x21   :  { %p721_p1 = pnand %p720_p0, %p714_p11 }
  0x23   :  { %724 = shalt.err (!%p721_p1)
}
  0x24   :  { %20 = dma.hbm_to_vmem [thread:$0]  %s889_s0, 16, %s18_s27, [#allocation3]  }
  0x25   :  { %s725_s15 = scalar_lea.hbm %s891_s2, 128 }
  0x26   :  { %p726_p2 = scmp.ne.s32.totalorder %s891_s2, %s725_s15  ;;  %p729_p3 = scmp.lt.u32.totalorder %s725_s15, %s891_s2 }
  0x28   :  { %p731_p4 = pnand %p729_p3, %p726_p2 }
  0x2a   :  { %734 = shalt.err (!%p731_p4)
}
  0x2b   :  { %s735_s20 = scalar_lea.vmem %s40_s29, 128  ;;  %p740_p6 = scmp.lt.s32.totalorder %s40_s29, %s40_s29 }
  0x2c   :  { %p736_p5 = scmp.ne.s32.totalorder %s40_s29, %s735_s20  ;;  %p741_p7 = scmp.lt.s32.totalorder %s735_s20, %s735_s20 }
  0x2e   :  { %p742_p8 = por %p741_p7, %p740_p6 }
  0x30   :  { %p743_p9 = pnand %p742_p8, %p736_p5 }
  0x32   :  { %746 = shalt.err (!%p743_p9)
}
  0x33   :  { %42 = dma.hbm_to_vmem [thread:$0]  %s891_s2, 128, %s40_s29, [#allocation6]  }
  0x34   :  { %769 = dma.done.wait [#allocation3], 16  }
  0x35   :  { %770 = vsyncadd [#allocation3], 4294967280 }
  0x36   :  { %771 = dma.done.wait [#allocation6], 3968  }
  0x37   :  { %772 = vsyncadd [#allocation6], 4294963328  ;;  %v780_v0 = vmov 0.0   ;;  %vm781_vm0 = vmmov 0   ;;  %v649_v1 = vld [vmem:[#allocation5] sm:$0xff]   ;;  %v650_v2 = vld [vmem:[#allocation5 + $0x8] sm:$0xff]  }
  0x38   :  { %565 = vmatprep.subr.bf16.mxu0 %v780_v0  ;;  %577 = vmatprep.mubr.msk.bf16.mxu0 %vm781_vm0, %v780_v0  ;;  %v651_v3 = vld [vmem:[#allocation5 + $0x10] sm:$0xff]   ;;  %v656_v5 = vld [vmem:[#allocation5 + $0x38] sm:$0xff]   ;;  %v653_v7 = vld [vmem:[#allocation5 + $0x20] sm:$0xff]   ;;  %vm103_vm1 = vcmask 785408   ;;  %vm478_vm2 = vcmask 1040384   ;;  %s782_s2 = smov [#allocation8]  }
  0x39   :  { %581 = vmatprep.subr.bf16.mxu1 %v780_v0  ;;  %597 = vmatprep.mubr.msk.bf16.mxu1 %vm781_vm0, %v780_v0  ;;  %v655_v4 = vld [vmem:[#allocation5 + $0x30] sm:$0xff]   ;;  %v652_v6 = vld [vmem:[#allocation5 + $0x18] sm:$0xff]   ;;  %v657_v8 = vld [vmem:[#allocation5 + $0x40] sm:$0xff]   ;;  %vm479_vm3 = vsmask.f32 256  ;;  %s490_s22 = sshll.u32 %s782_s2, 4  ;;  %s491_s22 = int_to_ptr.vmem [resolvable:$true] %s490_s22 }
  0x3a   :  { %566 = vmatpush3.bf16.msra.mxu0 %v649_v1  ;;  %582 = vmatpush3.bf16.msra.mxu1 %v655_v4  ;;  %v658_v9 = vld [vmem:[#allocation5 + $0x48] sm:$0xff]   ;;  %v659_v11 = vld [vmem:[#allocation5 + $0x50] sm:$0xff]   ;;  %v54_v12 = vld [vmem:[#allocation2] sm:$0x1]  ;;  %s747_s23 = scalar_lea.vmem %s491_s22, 16  ;;  %s751_s24 = scalar_lea.vmem %s491_s22, 32 }
  0x3b   :  { %567 = vmatprep.subr.bf16.mxu0 %v780_v0  ;;  %583 = vmatprep.subr.bf16.mxu1 %v780_v0  ;;  %v654_v10 = vld [vmem:[#allocation5 + $0x28] sm:$0xff]   ;;  %v660_v13 = vld [vmem:[#allocation5 + $0x58] sm:$0xff]   ;;  %v661_v14 = vld [vmem:[#allocation5 + $0x60] sm:$0xff]   ;;  %p748_p10 = scmp.ne.s32.totalorder %s491_s22, %s747_s23  ;;  %p752_p11 = scmp.lt.s32.totalorder %s491_s22, %s491_s22 }
  0x3c   :  { %v662_v15 = vld [vmem:[#allocation5 + $0x68] sm:$0xff]   ;;  %v663_v16 = vld [vmem:[#allocation5 + $0x70] sm:$0xff]   ;;  %v664_v17 = vld [vmem:[#allocation5 + $0x78] sm:$0xff]   ;;  %p753_p12 = scmp.lt.s32.totalorder %s751_s24, %s747_s23 }
  0x3d   :  { %v665_v18 = vld [vmem:[#allocation5 + $0x80] sm:$0xff]   ;;  %v666_v19 = vld [vmem:[#allocation5 + $0x88] sm:$0xff]   ;;  %v667_v20 = vld [vmem:[#allocation5 + $0x90] sm:$0xff]  }
  0x3e   :  { %568 = vmatpush3.bf16.msra.mxu0 %v650_v2  ;;  %584 = vmatpush3.bf16.msra.mxu1 %v656_v5  ;;  %v668_v21 = vld [vmem:[#allocation5 + $0x98] sm:$0xff]   ;;  %v53_v22 = vld [vmem:[#allocation7] sm:$0xff]  ;;  %v669_v30 = vld [vmem:[#allocation5 + $0xa0] sm:$0xff]   ;;  %p754_p13 = por %p753_p12, %p752_p11 }
  0x3f   :  { %569 = vmatprep.subr.bf16.mxu0 %v780_v0  ;;  %585 = vmatprep.subr.bf16.mxu1 %v780_v0  ;;  %v670_v31 = vld [vmem:[#allocation5 + $0xa8] sm:$0xff]   ;;  %v671_v32 = vld [vmem:[#allocation5 + $0xb0] sm:$0xff]   ;;  %v672_v33 = vld [vmem:[#allocation5 + $0xb8] sm:$0xff]   ;;  %v214_v38 = vrot.slane %v53_v22, 1  ;;  %v257_v39 = vrot.slane %v53_v22, 4  ;;  %v326_v51 = vrot.slane %v53_v22, 2 }
  0x40   :  { %v673_v34 = vld [vmem:[#allocation5 + $0xc0] sm:$0xff]   ;;  %v674_v35 = vld [vmem:[#allocation5 + $0xc8] sm:$0xff]   ;;  %v675_v36 = vld [vmem:[#allocation5 + $0xd0] sm:$0xff]   ;;  %v434_v59 = vrot.slane %v53_v22, 3  ;;  %p755_p0 = pnand %p754_p13, %p748_p10 }
  0x41   :  { %v676_v37 = vld [vmem:[#allocation5 + $0xd8] sm:$0xff]   ;;  %v677_v49 = vld [vmem:[#allocation5 + $0xe0] sm:$0xff]   ;;  %v678_v50 = vld [vmem:[#allocation5 + $0xe8] sm:$0xff]  }
  0x42   :  { %570 = vmatpush3.bf16.msra.mxu0 %v651_v3  ;;  %586 = vmatpush3.bf16.msra.mxu1 %v657_v8  ;;  %vm480_vm4 = vmand %vm478_vm2, %vm479_vm3  ;;  %v481_v2 = vld [vmem:[#allocation8] sm:$0x1] }
  0x43   :  { %571 = vmatprep.subr.bf16.mxu0 %v780_v0  ;;  %587 = vmatprep.subr.bf16.mxu1 %v780_v0 }
  0x46   :  { %572 = vmatpush3.bf16.msra.mxu0 %v652_v6  ;;  %588 = vmatpush3.bf16.msra.mxu1 %v658_v9 }
  0x47   :  { %573 = vmatprep.subr.bf16.mxu0 %v780_v0  ;;  %589 = vmatprep.subr.bf16.mxu1 %v780_v0 }
  0x4a   :  { %574 = vmatpush3.bf16.msra.mxu0 %v653_v7  ;;  %590 = vmatpush3.bf16.msra.mxu1 %v659_v11 }
  0x4b   :  { %575 = vmatprep.subr.bf16.mxu0 %v780_v0  ;;  %591 = vmatprep.subr.bf16.mxu1 %v780_v0 }
  0x4e   :  { %576 = vmatpush3.bf16.msra.mxu0 %v654_v10  ;;  %592 = vmatpush3.bf16.msra.mxu1 %v660_v13 }
  0x4f   :  { %601 = vmatprep.subr.bf16.mxu0 %v780_v0  ;;  %593 = vmatprep.subr.bf16.mxu1 %v780_v0 }
  0x51   :  { %578 = vmatmul.mubr.msk.bf16.vlgmr.msra.gmra.mrb[0].mxu0 %vm103_vm1, %v54_v12 }
  0x52   :  { %617 = vmatprep.mubr.msk.bf16.mxu0 %vm781_vm0, %v780_v0  ;;  %594 = vmatpush3.bf16.msra.mxu1 %v661_v14 }
  0x53   :  { %595 = vmatprep.subr.bf16.mxu1 %v780_v0  ;;  %602 = vmatpush3.bf16.msra.mxu0 %v663_v16 }
  0x54   :  { %603 = vmatprep.subr.bf16.mxu0 %v780_v0 }
  0x56   :  { %596 = vmatpush3.bf16.msra.mxu1 %v662_v15 }
  0x57   :  { %621 = vmatprep.subr.bf16.mxu1 %v780_v0  ;;  %604 = vmatpush3.bf16.msra.mxu0 %v664_v17 }
  0x58   :  { %605 = vmatprep.subr.bf16.mxu0 %v780_v0 }
  0x5b   :  { %606 = vmatpush3.bf16.msra.mxu0 %v665_v18 }
  0x5c   :  { %607 = vmatprep.subr.bf16.mxu0 %v780_v0 }
  0x5f   :  { %608 = vmatpush3.bf16.msra.mxu0 %v666_v19 }
  0x60   :  { %609 = vmatprep.subr.bf16.mxu0 %v780_v0 }
  0x63   :  { %610 = vmatpush3.bf16.msra.mxu0 %v667_v20 }
  0x64   :  { %611 = vmatprep.subr.bf16.mxu0 %v780_v0 }
  0x67   :  { %612 = vmatpush3.bf16.msra.mxu0 %v668_v21 }
  0x68   :  { %613 = vmatprep.subr.bf16.mxu0 %v780_v0 }
  0x6b   :  { %614 = vmatpush3.bf16.msra.mxu0 %v669_v30 }
  0x6c   :  { %615 = vmatprep.subr.bf16.mxu0 %v780_v0 }
  0x6f   :  { %616 = vmatpush3.bf16.msra.mxu0 %v670_v31 }
 0x124   :  { %v141_v23 = vpop.f32.mrb[0].mxu0 }
 0x125   :  { %v142_v24 = vadd.f32 %v141_v23, %v53_v22  ;;  %v579_v25 = vpop.f32.mrb[1].mxu0 }
 0x126   :  { %v144_v26 = vpop.f32.mrb[2].mxu0 }
 0x127   :  { %v147_v27 = vmax.f32 %v142_v24, 0.0  ;;  %v580_v28 = vpop.f32.mrb[3].mxu0 }
 0x129   :  { %v164_v29 = vpack.c.bf16 %v147_v27, %v147_v27  ;;  %v259_v44 = vmul.f32 %v257_v39, %v147_v27 }
 0x12b   :  { %598 = vmatmul.mubr.bf16.vlgmr.msra.gmra.mrb[0].mxu1 %v164_v29 }
 0x12c   :  { %637 = vmatprep.mubr.msk.bf16.mxu1 %vm781_vm0, %v780_v0  ;;  %622 = vmatpush3.bf16.msra.mxu1 %v671_v32 }
 0x12d   :  { %623 = vmatprep.subr.bf16.mxu1 %v780_v0 }
 0x130   :  { %624 = vmatpush3.bf16.msra.mxu1 %v672_v33 }
 0x131   :  { %625 = vmatprep.subr.bf16.mxu1 %v780_v0 }
 0x134   :  { %626 = vmatpush3.bf16.msra.mxu1 %v673_v34 }
 0x135   :  { %627 = vmatprep.subr.bf16.mxu1 %v780_v0 }
 0x138   :  { %628 = vmatpush3.bf16.msra.mxu1 %v674_v35 }
 0x139   :  { %629 = vmatprep.subr.bf16.mxu1 %v780_v0 }
 0x13c   :  { %630 = vmatpush3.bf16.msra.mxu1 %v675_v36 }
 0x13d   :  { %631 = vmatprep.subr.bf16.mxu1 %v780_v0 }
 0x140   :  { %632 = vmatpush3.bf16.msra.mxu1 %v676_v37 }
 0x141   :  { %633 = vmatprep.subr.bf16.mxu1 %v780_v0 }
 0x144   :  { %634 = vmatpush3.bf16.msra.mxu1 %v677_v49 }
 0x145   :  { %635 = vmatprep.subr.bf16.mxu1 %v780_v0 }
 0x148   :  { %636 = vmatpush3.bf16.msra.mxu1 %v678_v50 }
 0x1fe   :  { %v250_v40 = vpop.f32.mrb[0].mxu1 }
 0x1ff   :  { %v251_v41 = vadd.f32 %v250_v40, %v214_v38  ;;  %v599_v42 = vpop.f32.mrb[1].mxu1 }
 0x200   :  { %v253_v43 = vpop.f32.mrb[2].mxu1 }
 0x201   :  { %v256_v45 = vmax.f32 %v251_v41, 0.0  ;;  %v600_v46 = vpop.f32.mrb[3].mxu1 }
 0x203   :  { %v260_v47 = vadd.f32 %v259_v44, %v256_v45 }
 0x205   :  { %v261_v48 = vpack.c.bf16 %v260_v47, %v260_v47 }
 0x207   :  { %618 = vmatmul.mubr.bf16.vlgmr.msra.gmra.mrb[4].mxu0 %v261_v48 }
 0x2da   :  { %v362_v52 = vpop.f32.mrb[4].mxu0 }
 0x2db   :  { %v363_v53 = vadd.f32 %v362_v52, %v326_v51  ;;  %v619_v54 = vpop.f32.mrb[5].mxu0 }
 0x2dc   :  { %v365_v55 = vpop.f32.mrb[6].mxu0 }
 0x2dd   :  { %v368_v56 = vmax.f32 %v363_v53, 0.0  ;;  %v620_v57 = vpop.f32.mrb[7].mxu0 }
 0x2df   :  { %v385_v58 = vpack.c.bf16 %v368_v56, %v368_v56 }
 0x2e1   :  { %638 = vmatmul.mubr.bf16.vlgmr.msra.gmra.mrb[4].mxu1 %v385_v58 }
 0x3b4   :  { %v470_v60 = vpop.f32.mrb[4].mxu1 }
 0x3b5   :  { %v471_v61 = vadd.f32 %v470_v60, %v434_v59  ;;  %v639_v62 = vpop.f32.mrb[5].mxu1 }
 0x3b6   :  { %v473_v63 = vpop.f32.mrb[6].mxu1 }
 0x3b7   :  { %679 = vtanh.f32 %v471_v61  ;;  %v640_v1 = vpop.f32.mrb[7].mxu1 }
 0x3c1   :  { %v680_v0 = vpop.eup %679 }
 0x3c2   :  { %v477_v3 = vpack.c.bf16 %v680_v0, %v680_v0 }
 0x3c4   :  { %v482_v4 = vsel %vm480_vm4, %v477_v3, %v481_v2 }
 0x3c5   :  { %483 = vst [vmem:[#allocation8] sm:$0x1] %v482_v4 }
 0x3c6   :  { %758 = shalt.err (!%p755_p0)
}
 0x3c7   :  { %s759_s27 = scalar_lea.hbm %s892_s3, 16 }
 0x3c8   :  { %p760_p1 = scmp.ne.s32.totalorder %s892_s3, %s759_s27  ;;  %p763_p2 = scmp.lt.u32.totalorder %s759_s27, %s892_s3 }
 0x3ca   :  { %p765_p3 = pnand %p763_p2, %p760_p1 }
 0x3cc   :  { %768 = shalt.err (!%p765_p3)
}
 0x3cd   :  { %493 = dma.vmem_to_hbm [thread:$0]  %s491_s22, 16, %s892_s3, [#allocation4]  }
 0x3ce   :  { %773 = dma.done.wait [#allocation4], 16  }
 0x3cf   :  { %774 = vsyncadd [#allocation4], 4294967280 }
 0x3d0   :  { %497 = vsyncpa [#allocation3], 1 }
 0x3d1   :  { %498 = vsyncpa [#allocation6], 1 }
 0x3d2   :  { %499 = vsyncpa [#allocation4], 1 }

</bundles_post_ra>
